<compile_context>
chip_gen: v6e
topology: v6e:2x2x1
jax: 0.10.0
libtpu: 0.0.40
codegen_flags: <defaults>
</compile_context>

<pallas_src>
import jax
import jax.numpy as jnp
from jax.experimental import pallas as pl
from jax.experimental.pallas import tpu as pltpu


_PAD_LOGIT = -1e30          # bias fill for padded vocab columns; exp(pad - max) underflows to 0
_VMEM_HEADROOM = 12 << 20   # leave room for internal scratch / semaphores / DMA descriptors


# ----------------------------------------------------------------------------- utilities
def _round_up(x, m):
    return ((x + m - 1) // m) * m


def _nbytes(a):
    return a.size * a.dtype.itemsize


def _vmem_capacity_bytes():
    try:
        return int(pltpu.get_tpu_info().vmem_capacity_bytes)
    except Exception:
        return 64 << 20      # conservative fallback (v7x physical VMEM)


def _clamp_vmem(requested):
    cap = _vmem_capacity_bytes() - _VMEM_HEADROOM
    return int(min(max(int(requested), 16 << 20), cap))


def _num_vocab_splits():
    # v7x (and v4/v5p megacore) chips have 2 TensorCores; shard the HBM-bound vocab stream
    # across them with a leading "parallel" grid axis.  v5e/v6e: single TC -> 1 split.
    try:
        kind = jax.devices()[0].device_kind.lower()
    except Exception:
        return 1
    return 2 if ("v7" in kind or "v4" in kind or "v5p" in kind) else 1


def _plan_vocab_tiling(V, H, wo_itemsize, max_batch=256):
    """Lane-dense vocab tile sized from the VMEM budget; V padded so every (split, tile) is
    full -- never falls back to a monolithic (H, V) VMEM block."""
    n_splits = _num_vocab_splits()
    budget = _vmem_capacity_bytes() - (16 << 20)

    def streamed_footprint(tv):   # double-buffered streamed operands per grid step
        return 2 * (H * tv * wo_itemsize + tv * 4 + max_batch * tv * 4)

    tv = 1024                     # 512-1024 measured ~85-86% of HBM roofline
    while tv > 128 and streamed_footprint(tv) > budget // 2:
        tv //= 2
    cols_per_split = -(-V // n_splits)
    tv = min(tv, _round_up(cols_per_split, 128))
    npv = -(-cols_per_split // tv)
    return {"tv": tv, "npv": npv, "n_splits": n_splits, "v_pad": n_splits * npv * tv}


# ----------------------------------------------------------------------------- kernel A
# One-time work per decoder step: GRU cell + dot attention + concat Linear + tanh.
def decoder_core_kernel(x_ref, h0_ref, enc_ref,
                        wi_ref, wh_ref, bi_ref, bh_ref,
                        wc1_ref, wc2_ref, bc_ref,
                        hid_ref, cout_ref):
    f32 = jnp.float32
    H = hid_ref.shape[-1]
    wdt = wi_ref.dtype                      # bf16 weights

    x = x_ref[...]                          # (B, H) f32
    h0 = h0_ref[...]                        # (B, H) f32

    # Fused GRU gates (PyTorch order r, z, n in columns): 2 matmuls instead of 6.
    gi = jnp.dot(x.astype(wdt), wi_ref[...], preferred_element_type=f32) + bi_ref[...]   # (B,3H)
    gh = jnp.dot(h0.astype(wdt), wh_ref[...], preferred_element_type=f32) + bh_ref[...]  # (B,3H)
    r = jax.nn.sigmoid(gi[:, 0:H] + gh[:, 0:H])
    z = jax.nn.sigmoid(gi[:, H:2 * H] + gh[:, H:2 * H])
    n = jnp.tanh(gi[:, 2 * H:3 * H] + r * gh[:, 2 * H:3 * H])
    h_new = (1.0 - z) * n + z * h0                                        # (B, H)
    hid_ref[...] = h_new

    # Dot-score Luong attention on the MXU, bf16 operands / f32 accumulation.
    enc = enc_ref[...]                                                    # (B, L, H) bf16
    hq = h_new.astype(enc.dtype)[:, None, :]                              # (B, 1, H)
    s = jnp.einsum("bqh,bkh->bqk", hq, enc, preferred_element_type=f32)   # (B, 1, L)
    s = s - jnp.max(s, axis=-1, keepdims=True)
    e = jnp.exp(s)
    attn = e * pl.reciprocal(jnp.sum(e, axis=-1, keepdims=True), approx=True)
    ctx = jnp.einsum("bqk,bkh->bqh", attn.astype(enc.dtype), enc,
                     preferred_element_type=f32)[:, 0, :]                 # (B, H)

    # concat Linear split into two matmuls (avoids in-kernel concat) + tanh.
    cout_ref[...] = jnp.tanh(
        jnp.dot(h_new.astype(wdt), wc1_ref[...], preferred_element_type=f32)
        + jnp.dot(ctx.astype(wdt), wc2_ref[...], preferred_element_type=f32)
        + bc_ref[...]
    )                                                                     # (B, H)


# ----------------------------------------------------------------------------- kernel B
# Vocab projection, streamed over (split, vocab-tile) with online softmax statistics.
def vocab_proj_kernel(c_ref, wo_ref, bo_ref, logits_ref, m_ref, l_ref):
    f32 = jnp.float32
    j = pl.program_id(1)

    @pl.when(j == 0)
    def _():
        m_ref[...] = jnp.full_like(m_ref, -jnp.inf)
        l_ref[...] = jnp.zeros_like(l_ref)

    logit = jnp.dot(c_ref[...].astype(wo_ref.dtype), wo_ref[...],
                    preferred_element_type=f32) + bo_ref[...]             # (B, tv)
    logits_ref[...] = logit

    m_old = m_ref[...][0]                                                 # (B, 1)
    l_old = l_ref[...][0]
    m_new = jnp.maximum(m_old, jnp.max(logit, axis=-1, keepdims=True))
    l_new = l_old * jnp.exp(m_old - m_new) + jnp.sum(jnp.exp(logit - m_new),
                                                     axis=-1, keepdims=True)
    m_ref[...] = m_new[None]
    l_ref[...] = l_new[None]


# ----------------------------------------------------------------------------- kernel C
# Normalize each lane-dense vocab tile with the global max / sum.
def softmax_norm_kernel(logits_ref, m_ref, l_ref, out_ref):
    inv_l = pl.reciprocal(l_ref[...], approx=True)                        # (B, 1)
    out_ref[...] = jnp.exp(logits_ref[...] - m_ref[...]) * inv_l


# ----------------------------------------------------------------------------- wrappers
def prepare_vocab_projection(params):
    """One-time prep: pick the vocab tiling plan and pad wo/bias columns accordingly."""
    wo_t = params["wo_t"]                       # (H, V) bf16
    b_o = params["b_o"]                         # (1, V) f32
    H, V = wo_t.shape
    plan = _plan_vocab_tiling(V, H, wo_t.dtype.itemsize)
    v_pad = plan["v_pad"]
    if v_pad != V:
        wo_t = jnp.pad(wo_t, ((0, 0), (0, v_pad - V)))
        b_o = jnp.pad(b_o, ((0, 0), (0, v_pad - V)), constant_values=_PAD_LOGIT)
    p = dict(params)
    p["wo_t_padded"] = wo_t
    p["b_o_padded"] = b_o
    p["vocab_plan"] = plan
    return p


def luong_attn_decoder_step(input_step, last_hidden, encoder_outputs, params):
    """
    input_step:      (1, B) int32 token ids
    last_hidden:     (1, B, H) float32   (n_layers = 1)
    encoder_outputs: (L, B, H) float32
    returns: (output_probs (B, V) f32, hidden (1, B, H) f32)
    """
    if "vocab_plan" not in params:
        params = prepare_vocab_projection(params)

    f32 = jnp.float32
    B = input_step.shape[1]
    H = params["wc1_t"].shape[0]
    V = params["wo_t"].shape[1]
    L = encoder_outputs.shape[0]
    plan = params["vocab_plan"]
    tv, npv, n_splits, v_pad = plan["tv"], plan["npv"], plan["n_splits"], plan["v_pad"]

    # glue: embedding gather (eval-mode dropout = identity) + batch-major bf16 encoder outputs
    embedded = jnp.take(params["embedding"], input_step[0], axis=0).astype(f32)   # (B, H)
    h0 = last_hidden[0].astype(f32)                                               # (B, H)
    enc = jnp.transpose(encoder_outputs, (1, 0, 2)).astype(jnp.bfloat16)          # (B, L, H)

    # ---- kernel A: GRU + attention + concat/tanh (one-time, whole arrays in VMEM) ----
    core_args = (
        embedded, h0, enc,
        params["wi_t"], params["wh_t"], params["bi"], params["bh"],
        params["wc1_t"], params["wc2_t"], params["b_c"],
    )
    vmem_a = _clamp_vmem(2 * sum(_nbytes(a) for a in core_args)
                         + 2 * (B * H * 4) + (4 << 20))
    h_new, c_out = pl.pallas_call(
        decoder_core_kernel,
        out_shape=(jax.ShapeDtypeStruct((B, H), f32),
                   jax.ShapeDtypeStruct((B, H), f32)),
        compiler_params=pltpu.CompilerParams(vmem_limit_bytes=vmem_a),
    )(*core_args)

    # ---- kernel B: streamed vocab projection with per-split online softmax stats ----
    wdt_size = params["wo_t_padded"].dtype.itemsize
    stream_bytes = 2 * (H * tv * wdt_size + tv * 4 + B * tv * 4)     # double-buffered blocks
    resident_bytes = B * H * 4 + 4 * n_splits * B * 4
    vmem_b = _clamp_vmem(2 * stream_bytes + resident_bytes + (4 << 20))

    logits, m_part, l_part = pl.pallas_call(
        vocab_proj_kernel,
        grid=(n_splits, npv),
        out_shape=(
            jax.ShapeDtypeStruct((B, v_pad), f32),
            jax.ShapeDtypeStruct((n_splits, B, 1), f32),
            jax.ShapeDtypeStruct((n_splits, B, 1), f32),
        ),
        in_specs=[
            pl.BlockSpec((B, H), lambda c, j: (0, 0)),
            pl.BlockSpec((H, tv), lambda c, j, npv=npv: (0, c * npv + j)),
            pl.BlockSpec((1, tv), lambda c, j, npv=npv: (0, c * npv + j)),
        ],
        out_specs=(
            pl.BlockSpec((B, tv), lambda c, j, npv=npv: (0, c * npv + j)),
            pl.BlockSpec((1, B, 1), lambda c, j: (c, 0, 0)),   # per-split running max
            pl.BlockSpec((1, B, 1), lambda c, j: (c, 0, 0)),   # per-split running sum
        ),
        compiler_params=pltpu.CompilerParams(
            dimension_semantics=("parallel", "arbitrary"),
            vmem_limit_bytes=vmem_b,
        ),
    )(c_out, params["wo_t_padded"], params["b_o_padded"])

    # merge the per-split partial softmax statistics (tiny, plain XLA)
    m_glob = jnp.max(m_part, axis=0)                                     # (B, 1)
    l_glob = jnp.sum(l_part * jnp.exp(m_part - m_glob), axis=0)          # (B, 1)

    # ---- kernel C: normalize (lane-dense tiles, parallel grid axis) ----
    vmem_n = _clamp_vmem(4 * B * tv * 4 + 8 * B * 4 + (4 << 20))
    probs_pad = pl.pallas_call(
        softmax_norm_kernel,
        grid=(n_splits * npv,),
        out_shape=jax.ShapeDtypeStruct((B, v_pad), f32),
        in_specs=[
            pl.BlockSpec((B, tv), lambda j: (0, j)),
            pl.BlockSpec((B, 1), lambda j: (0, 0)),
            pl.BlockSpec((B, 1), lambda j: (0, 0)),
        ],
        out_specs=pl.BlockSpec((B, tv), lambda j: (0, j)),
        compiler_params=pltpu.CompilerParams(
            dimension_semantics=("parallel",),
            vmem_limit_bytes=vmem_n,
        ),
    )(logits, m_glob, l_glob)

    return probs_pad[:, :V], h_new[None]        # hidden back to (1, B, H)


# ----------------------------------------------------------------------------- reference
def reference_step(input_step, last_hidden, encoder_outputs, params):
    f32 = jnp.float32
    H = params["wc1_t"].shape[0]
    x = jnp.take(params["embedding"], input_step[0], axis=0).astype(f32)   # (B, H)
    h0 = last_hidden[0].astype(f32)
    gi = x @ params["wi_t"].astype(f32) + params["bi"]
    gh = h0 @ params["wh_t"].astype(f32) + params["bh"]
    r = jax.nn.sigmoid(gi[:, 0:H] + gh[:, 0:H])
    z = jax.nn.sigmoid(gi[:, H:2 * H] + gh[:, H:2 * H])
    n = jnp.tanh(gi[:, 2 * H:3 * H] + r * gh[:, 2 * H:3 * H])
    h_new = (1.0 - z) * n + z * h0                                         # (B, H)
    scores = jnp.einsum("bh,lbh->bl", h_new, encoder_outputs)              # (B, L)
    attn = jax.nn.softmax(scores, axis=-1)
    context = jnp.einsum("bl,lbh->bh", attn, encoder_outputs)              # (B, H)
    c_out = jnp.tanh(h_new @ params["wc1_t"].astype(f32)
                     + context @ params["wc2_t"].astype(f32) + params["b_c"])
    logits = c_out @ params["wo_t"].astype(f32) + params["b_o"]
    return jax.nn.softmax(logits, axis=-1), h_new[None]


def init_params(key, hidden_size, output_size, vocab_size, weight_dtype=jnp.bfloat16):
    H, V = hidden_size, output_size
    keys = jax.random.split(key, 9)
    s = 0.1

    def rnd(k, shape):
        return (s * jax.random.normal(k, shape)).astype(jnp.float32)

    # PyTorch GRU: weight_ih_l0 (3H, H), weight_hh_l0 (3H, H), biases (3H,) in r,z,n order.
    w_ih = rnd(keys[0], (3 * H, H))
    w_hh = rnd(keys[1], (3 * H, H))
    b_ih = rnd(keys[2], (3 * H,))
    b_hh = rnd(keys[3], (3 * H,))
    w_c = rnd(keys[4], (H, 2 * H))          # concat Linear (H, 2H)
    b_c = rnd(keys[5], (H,))
    w_o = rnd(keys[6], (V, H))              # out Linear (V, H)
    b_o = rnd(keys[7], (V,))
    emb = rnd(keys[8], (vocab_size, H))

    wd = weight_dtype
    return {
        "embedding": emb,
        "wi_t": w_ih.T.astype(wd),            # (H, 3H) columns grouped [r | z | n]
        "wh_t": w_hh.T.astype(wd),            # (H, 3H)
        "bi": b_ih.reshape(1, 3 * H),
        "bh": b_hh.reshape(1, 3 * H),
        "wc1_t": w_c[:, :H].T.astype(wd),     # (H, H)  acts on rnn_output
        "wc2_t": w_c[:, H:].T.astype(wd),     # (H, H)  acts on context
        "b_c": b_c.reshape(1, H),
        "wo_t": w_o.T.astype(wd),             # (H, V)
        "b_o": b_o.reshape(1, V),
    }


if __name__ == "__main__":
    # NOTE: small demo shapes for the correctness run; production tuning should use
    # 128-aligned H and realistic V (the tiler pads V automatically either way).
    B, H, L, V = 2, 32, 8, 64          # batch, hidden, encoder seq len, vocab/output size
    vocab_size = V

    key = jax.random.PRNGKey(0)
    k_p, k_tok, k_hid, k_enc = jax.random.split(key, 4)

    params = init_params(k_p, H, V, vocab_size)
    params = prepare_vocab_projection(params)   # one-time padding / tiling plan

    input_step = jax.random.randint(k_tok, (1, B), 0, vocab_size, dtype=jnp.int32)
    last_hidden = (0.1 * jax.random.normal(k_hid, (1, B, H))).astype(jnp.float32)
    encoder_outputs = (0.1 * jax.random.normal(k_enc, (L, B, H))).astype(jnp.float32)

    out, hidden = luong_attn_decoder_step(input_step, last_hidden, encoder_outputs, params)
    out = jax.block_until_ready(out)
    hidden = jax.block_until_ready(hidden)

    ref_out, ref_hidden = reference_step(input_step, last_hidden, encoder_outputs, params)
    assert out.shape == (B, V) and hidden.shape == (1, B, H)
    assert jnp.allclose(out, ref_out, rtol=2e-2, atol=3e-3), \
        float(jnp.max(jnp.abs(out - ref_out)))
    assert jnp.allclose(hidden, ref_hidden, rtol=2e-2, atol=2e-3), \
        float(jnp.max(jnp.abs(hidden - ref_hidden)))
    assert jnp.allclose(jnp.sum(out, axis=1), 1.0, atol=5e-3)   # softmax rows sum to ~1

    print("KERNEL_OK")
</pallas_src>

<mosaic_0001>
module attributes {stable_mosaic.version = 11 : i64} {
  func.func @decoder_core_kernel(%arg0: memref<2x32xf32, #tpu.memory_space<vmem>>, %arg1: memref<2x32xf32, #tpu.memory_space<vmem>>, %arg2: memref<2x8x32xbf16, #tpu.memory_space<vmem>>, %arg3: memref<32x96xbf16, #tpu.memory_space<vmem>>, %arg4: memref<32x96xbf16, #tpu.memory_space<vmem>>, %arg5: memref<1x96xf32, #tpu.memory_space<vmem>>, %arg6: memref<1x96xf32, #tpu.memory_space<vmem>>, %arg7: memref<32x32xbf16, #tpu.memory_space<vmem>>, %arg8: memref<32x32xbf16, #tpu.memory_space<vmem>>, %arg9: memref<1x32xf32, #tpu.memory_space<vmem>>, %arg10: memref<2x32xf32, #tpu.memory_space<vmem>>, %arg11: memref<2x32xf32, #tpu.memory_space<vmem>>) attributes {dimension_semantics = [], scalar_prefetch = 0 : i64, scratch_operands = 0 : i64, tpu.core_type = #tpu.core_type<tc>} {
    %c0 = arith.constant 0 : index
    %c0_0 = arith.constant 0 : index
    %0 = vector.load %arg0[%c0, %c0_0] : memref<2x32xf32, #tpu.memory_space<vmem>>, vector<2x32xf32>
    %c0_1 = arith.constant 0 : index
    %c0_2 = arith.constant 0 : index
    %1 = vector.load %arg1[%c0_1, %c0_2] : memref<2x32xf32, #tpu.memory_space<vmem>>, vector<2x32xf32>
    %2 = arith.truncf %0 : vector<2x32xf32> to vector<2x32xbf16>
    %c0_3 = arith.constant 0 : index
    %c0_4 = arith.constant 0 : index
    %3 = vector.load %arg3[%c0_3, %c0_4] : memref<32x96xbf16, #tpu.memory_space<vmem>>, vector<32x96xbf16>
    %cst = arith.constant dense<0.000000e+00> : vector<2x96xf32>
    %4 = tpu.matmul %2, %3, %cst {dimension_numbers = #tpu.dot_dimension_numbers<[1], [0], [0], [1], [0, 0, 1, 1], [], []>} : vector<2x32xbf16>, vector<32x96xbf16>, vector<2x96xf32> -> vector<2x96xf32>
    %c0_5 = arith.constant 0 : index
    %c0_6 = arith.constant 0 : index
    %5 = vector.load %arg5[%c0_5, %c0_6] : memref<1x96xf32, #tpu.memory_space<vmem>>, vector<1x96xf32>
    %6 = vector.broadcast %5 : vector<1x96xf32> to vector<2x96xf32>
    %7 = arith.addf %4, %6 : vector<2x96xf32>
    %8 = arith.truncf %1 : vector<2x32xf32> to vector<2x32xbf16>
    %c0_7 = arith.constant 0 : index
    %c0_8 = arith.constant 0 : index
    %9 = vector.load %arg4[%c0_7, %c0_8] : memref<32x96xbf16, #tpu.memory_space<vmem>>, vector<32x96xbf16>
    %cst_9 = arith.constant dense<0.000000e+00> : vector<2x96xf32>
    %10 = tpu.matmul %8, %9, %cst_9 {dimension_numbers = #tpu.dot_dimension_numbers<[1], [0], [0], [1], [0, 0, 1, 1], [], []>} : vector<2x32xbf16>, vector<32x96xbf16>, vector<2x96xf32> -> vector<2x96xf32>
    %c0_10 = arith.constant 0 : index
    %c0_11 = arith.constant 0 : index
    %11 = vector.load %arg6[%c0_10, %c0_11] : memref<1x96xf32, #tpu.memory_space<vmem>>, vector<1x96xf32>
    %12 = vector.broadcast %11 : vector<1x96xf32> to vector<2x96xf32>
    %13 = arith.addf %10, %12 : vector<2x96xf32>
    %14 = vector.extract_strided_slice %7 {offsets = [0, 0], sizes = [2, 32], strides = [1, 1]} : vector<2x96xf32> to vector<2x32xf32>
    %15 = vector.extract_strided_slice %13 {offsets = [0, 0], sizes = [2, 32], strides = [1, 1]} : vector<2x96xf32> to vector<2x32xf32>
    %16 = arith.addf %14, %15 : vector<2x32xf32>
    %17 = arith.negf %16 : vector<2x32xf32>
    %18 = math.exp %17 : vector<2x32xf32>
    %cst_12 = arith.constant 1.000000e+00 : f32
    %19 = vector.broadcast %cst_12 : f32 to vector<2x32xf32>
    %20 = arith.addf %19, %18 : vector<2x32xf32>
    %21 = arith.divf %19, %20 : vector<2x32xf32>
    %22 = vector.extract_strided_slice %7 {offsets = [0, 32], sizes = [2, 32], strides = [1, 1]} : vector<2x96xf32> to vector<2x32xf32>
    %23 = vector.extract_strided_slice %13 {offsets = [0, 32], sizes = [2, 32], strides = [1, 1]} : vector<2x96xf32> to vector<2x32xf32>
    %24 = arith.addf %22, %23 : vector<2x32xf32>
    %25 = arith.negf %24 : vector<2x32xf32>
    %26 = math.exp %25 : vector<2x32xf32>
    %cst_13 = arith.constant 1.000000e+00 : f32
    %27 = vector.broadcast %cst_13 : f32 to vector<2x32xf32>
    %28 = arith.addf %27, %26 : vector<2x32xf32>
    %29 = arith.divf %27, %28 : vector<2x32xf32>
    %30 = vector.extract_strided_slice %7 {offsets = [0, 64], sizes = [2, 32], strides = [1, 1]} : vector<2x96xf32> to vector<2x32xf32>
    %31 = vector.extract_strided_slice %13 {offsets = [0, 64], sizes = [2, 32], strides = [1, 1]} : vector<2x96xf32> to vector<2x32xf32>
    %32 = arith.mulf %21, %31 : vector<2x32xf32>
    %33 = arith.addf %30, %32 : vector<2x32xf32>
    %34 = math.tanh %33 : vector<2x32xf32>
    %cst_14 = arith.constant 1.000000e+00 : f32
    %35 = vector.broadcast %cst_14 : f32 to vector<2x32xf32>
    %36 = arith.subf %35, %29 : vector<2x32xf32>
    %37 = arith.mulf %36, %34 : vector<2x32xf32>
    %38 = arith.mulf %29, %1 : vector<2x32xf32>
    %39 = arith.addf %37, %38 : vector<2x32xf32>
    %c0_15 = arith.constant 0 : index
    %c0_16 = arith.constant 0 : index
    %40 = vector.load %arg10[%c0_15, %c0_16] : memref<2x32xf32, #tpu.memory_space<vmem>>, vector<2x32xf32>
    tpu.vector_store %arg10[%c0_15, %c0_16], %39 {strides = array<i32>} : memref<2x32xf32, #tpu.memory_space<vmem>>, vector<2x32xf32>,
    %c0_17 = arith.constant 0 : index
    %c0_18 = arith.constant 0 : index
    %c0_19 = arith.constant 0 : index
    %41 = vector.load %arg2[%c0_17, %c0_18, %c0_19] : memref<2x8x32xbf16, #tpu.memory_space<vmem>>, vector<2x8x32xbf16>
    %42 = arith.truncf %39 : vector<2x32xf32> to vector<2x32xbf16>
    %43 = vector.shape_cast %42 : vector<2x32xbf16> to vector<2x1x32xbf16>
    "tpu.trace_start"() <{level = 10 : i32, message = "bqh,bkh->bqk"}> : () -> ()
    %cst_20 = arith.constant dense<0.000000e+00> : vector<2x1x8xf32>
    %44 = tpu.matmul %43, %41, %cst_20 {dimension_numbers = #tpu.dot_dimension_numbers<[2], [2], [1], [1], [0, 0, 0, 1, 1, 1], [0], [0]>} : vector<2x1x32xbf16>, vector<2x8x32xbf16>, vector<2x1x8xf32> -> vector<2x1x8xf32>
    "tpu.trace_stop"() : () -> ()
    %cst_21 = arith.constant dense<0xFF800000> : vector<2x1xf32>
    %45 = vector.multi_reduction <maximumf>, %44, %cst_21 [2] : vector<2x1x8xf32> to vector<2x1xf32>
    %46 = vector.shape_cast %45 : vector<2x1xf32> to vector<2x1x1xf32>
    %47 = vector.broadcast %46 : vector<2x1x1xf32> to vector<2x1x8xf32>
    %48 = arith.subf %44, %47 : vector<2x1x8xf32>
    %49 = math.exp %48 : vector<2x1x8xf32>
    %cst_22 = arith.constant dense<0.000000e+00> : vector<2x1xf32>
    %50 = vector.multi_reduction <add>, %49, %cst_22 [2] : vector<2x1x8xf32> to vector<2x1xf32>
    %51 = vector.shape_cast %50 : vector<2x1xf32> to vector<2x1x1xf32>
    %52 = tpu.reciprocal %51 {approx = true} : vector<2x1x1xf32> -> vector<2x1x1xf32>
    %53 = vector.broadcast %52 : vector<2x1x1xf32> to vector<2x1x8xf32>
    %54 = arith.mulf %49, %53 : vector<2x1x8xf32>
    %55 = arith.truncf %54 : vector<2x1x8xf32> to vector<2x1x8xbf16>
    "tpu.trace_start"() <{level = 10 : i32, message = "bqk,bkh->bqh"}> : () -> ()
    %cst_23 = arith.constant dense<0.000000e+00> : vector<2x1x32xf32>
    %56 = tpu.matmul %55, %41, %cst_23 {dimension_numbers = #tpu.dot_dimension_numbers<[2], [1], [1], [2], [0, 0, 0, 1, 1, 2], [0], [0]>} : vector<2x1x8xbf16>, vector<2x8x32xbf16>, vector<2x1x32xf32> -> vector<2x1x32xf32>
    "tpu.trace_stop"() : () -> ()
    %57 = vector.shape_cast %56 : vector<2x1x32xf32> to vector<2x32xf32>
    %58 = arith.truncf %39 : vector<2x32xf32> to vector<2x32xbf16>
    %c0_24 = arith.constant 0 : index
    %c0_25 = arith.constant 0 : index
    %59 = vector.load %arg7[%c0_24, %c0_25] : memref<32x32xbf16, #tpu.memory_space<vmem>>, vector<32x32xbf16>
    %cst_26 = arith.constant dense<0.000000e+00> : vector<2x32xf32>
    %60 = tpu.matmul %58, %59, %cst_26 {dimension_numbers = #tpu.dot_dimension_numbers<[1], [0], [0], [1], [0, 0, 1, 1], [], []>} : vector<2x32xbf16>, vector<32x32xbf16>, vector<2x32xf32> -> vector<2x32xf32>
    %61 = arith.truncf %57 : vector<2x32xf32> to vector<2x32xbf16>
    %c0_27 = arith.constant 0 : index
    %c0_28 = arith.constant 0 : index
    %62 = vector.load %arg8[%c0_27, %c0_28] : memref<32x32xbf16, #tpu.memory_space<vmem>>, vector<32x32xbf16>
    %cst_29 = arith.constant dense<0.000000e+00> : vector<2x32xf32>
    %63 = tpu.matmul %61, %62, %cst_29 {dimension_numbers = #tpu.dot_dimension_numbers<[1], [0], [0], [1], [0, 0, 1, 1], [], []>} : vector<2x32xbf16>, vector<32x32xbf16>, vector<2x32xf32> -> vector<2x32xf32>
    %64 = arith.addf %60, %63 : vector<2x32xf32>
    %c0_30 = arith.constant 0 : index
    %c0_31 = arith.constant 0 : index
    %65 = vector.load %arg9[%c0_30, %c0_31] : memref<1x32xf32, #tpu.memory_space<vmem>>, vector<1x32xf32>
    %66 = vector.broadcast %65 : vector<1x32xf32> to vector<2x32xf32>
    %67 = arith.addf %64, %66 : vector<2x32xf32>
    %68 = math.tanh %67 : vector<2x32xf32>
    %c0_32 = arith.constant 0 : index
    %c0_33 = arith.constant 0 : index
    %69 = vector.load %arg11[%c0_32, %c0_33] : memref<2x32xf32, #tpu.memory_space<vmem>>, vector<2x32xf32>
    tpu.vector_store %arg11[%c0_32, %c0_33], %68 {strides = array<i32>} : memref<2x32xf32, #tpu.memory_space<vmem>>, vector<2x32xf32>,
    return
  }
}

</mosaic_0001>

<bundles_post_ra>
// kernel: tpu_custom_call.1
= control target key start
LH: loop header
LB: loop body
LE: loop exit
PB: predicated region body
PF: predicated region fallthrough
CT: control target
= control target key end

     0   :  { %17 = vsyncpa [#allocation3], 0  ;;  %s1232_s0 = inlined_call_operand.hbm [shape: f32[2,32], index: 0, kind: input, shape index: {}]   ;;  %s1233_s1 = inlined_call_operand.hbm [shape: f32[2,32], index: 1, kind: input, shape index: {}]   ;;  %s1234_s2 = inlined_call_operand.hbm [shape: bf16[2,8,32], index: 2, kind: input, shape index: {}]   ;;  %s1235_s3 = inlined_call_operand.hbm [shape: bf16[32,96], index: 3, kind: input, shape index: {}]   ;;  %s1236_s4 = inlined_call_operand.hbm [shape: bf16[32,96], index: 4, kind: input, shape index: {}]   ;;  %s1237_s5 = inlined_call_operand.vmem [shape: f32[1,96], index: 5, kind: input, shape index: {}]   ;;  %s1238_s6 = inlined_call_operand.vmem [shape: f32[1,96], index: 6, kind: input, shape index: {}]   ;;  %s1239_s7 = inlined_call_operand.hbm [shape: bf16[32,32], index: 7, kind: input, shape index: {}]   ;;  %s1240_s8 = inlined_call_operand.hbm [shape: bf16[32,32], index: 8, kind: input, shape index: {}]   ;;  %s1241_s9 = inlined_call_operand.vmem [shape: f32[1,32], index: 9, kind: input, shape index: {}]   ;;  %s1242_s10 = inlined_call_operand.hbm [shape: f32[2,32], index: 10, kind: output, shape index: {0}]   ;;  %s1243_s11 = inlined_call_operand.hbm [shape: f32[2,32], index: 11, kind: output, shape index: {1}]  }
   0x1   :  { %18 = vsyncpa [#allocation6], 0 }
   0x2   :  { %19 = vsyncpa [#allocation9], 0 }
   0x3   :  { %20 = vsyncpa [#allocation12], 0 }
   0x4   :  { %21 = vsyncpa [#allocation4], 0 }
   0x5   :  { %22 = vsyncpa [#allocation16], 0  ;;  %s1048_s17 = smov [#allocation5]  }
   0x6   :  { %s39_s18 = sshll.u32 %s1048_s17, 4  ;;  %s40_s18 = int_to_ptr.vmem [resolvable:$true] %s39_s18 }
   0x7   :  { %s864_s19 = scalar_lea.vmem %s40_s18, 32  ;;  %p869_p1 = scmp.lt.s32.totalorder %s40_s18, %s40_s18 }
   0x8   :  { %p865_p0 = scmp.ne.s32.totalorder %s40_s18, %s864_s19  ;;  %p870_p2 = scmp.lt.s32.totalorder %s864_s19, %s864_s19 }
   0xa   :  { %p871_p3 = por %p870_p2, %p869_p1 }
   0xc   :  { %p872_p4 = pnand %p871_p3, %p865_p0 }
   0xe   :  { %875 = shalt.err (!%p872_p4)
}
   0xf   :  { %42 = dma.hbm_to_vmem [thread:$0]  %s1233_s1, 32, %s40_s18, [#allocation6]  }
  0x10   :  { %s1049_s22 = smov [#allocation8]   ;;  %s1050_s24 = smov [#allocation11]  }
  0x11   :  { %s60_s23 = sshll.u32 %s1049_s22, 4  ;;  %s88_s25 = sshll.u32 %s1050_s24, 4  ;;  %s61_s23 = int_to_ptr.vmem [resolvable:$true] %s60_s23  ;;  %s89_s25 = int_to_ptr.vmem [resolvable:$true] %s88_s25 }
  0x12   :  { %s884_s26 = scalar_lea.vmem %s61_s23, 256  ;;  %p889_p6 = scmp.lt.s32.totalorder %s61_s23, %s61_s23 }
  0x13   :  { %p885_p5 = scmp.ne.s32.totalorder %s61_s23, %s884_s26  ;;  %p890_p7 = scmp.lt.s32.totalorder %s884_s26, %s884_s26 }
  0x15   :  { %p891_p8 = por %p890_p7, %p889_p6 }
  0x17   :  { %p892_p9 = pnand %p891_p8, %p885_p5 }
  0x19   :  { %895 = shalt.err (!%p892_p9)
}
  0x1a   :  { %s1051_s27 = smov 64   ;;  %s1052_s28 = smov 4  }
  0x1b   :  { %66 = dma.hbm_to_vmem [thread:$0]  %s1235_s3, 256, %s61_s23, [#allocation9], %s1051_s27, %s1051_s27, %s1052_s28  }
  0x1c   :  { %s904_s1 = scalar_lea.vmem %s89_s25, 256  ;;  %p909_p11 = scmp.lt.s32.totalorder %s89_s25, %s89_s25 }
  0x1d   :  { %p905_p10 = scmp.ne.s32.totalorder %s89_s25, %s904_s1  ;;  %p910_p12 = scmp.lt.s32.totalorder %s904_s1, %s904_s1 }
  0x1f   :  { %p911_p13 = por %p910_p12, %p909_p11 }
  0x21   :  { %p912_p0 = pnand %p911_p13, %p905_p10 }
  0x23   :  { %915 = shalt.err (!%p912_p0)
}
  0x24   :  { %94 = dma.hbm_to_vmem [thread:$0]  %s1239_s7, 256, %s89_s25, [#allocation12], %s1051_s27, %s1051_s27, %s1052_s28  }
  0x25   :  { %s1053_s14 = smov [#allocation2]   ;;  %s1054_s16 = smov [#allocation7]  }
  0x26   :  { %s29_s15 = sshll.u32 %s1053_s14, 4  ;;  %s48_s3 = sshll.u32 %s1054_s16, 4  ;;  %s30_s15 = int_to_ptr.vmem [resolvable:$true] %s29_s15  ;;  %s49_s3 = int_to_ptr.vmem [resolvable:$true] %s48_s3 }
  0x27   :  { %s924_s17 = scalar_lea.vmem %s30_s15, 32  ;;  %p929_p2 = scmp.lt.s32.totalorder %s30_s15, %s30_s15 }
  0x28   :  { %p925_p1 = scmp.ne.s32.totalorder %s30_s15, %s924_s17  ;;  %p930_p3 = scmp.lt.s32.totalorder %s924_s17, %s924_s17 }
  0x2a   :  { %p931_p4 = por %p930_p3, %p929_p2 }
  0x2c   :  { %p932_p5 = pnand %p931_p4, %p925_p1 }
  0x2e   :  { %935 = shalt.err (!%p932_p5)
}
  0x2f   :  { %32 = dma.hbm_to_vmem [thread:$0]  %s1232_s0, 32, %s30_s15, [#allocation3]  }
  0x30   :  { %s944_s20 = scalar_lea.vmem %s49_s3, 128  ;;  %p949_p7 = scmp.lt.s32.totalorder %s49_s3, %s49_s3 }
  0x31   :  { %p945_p6 = scmp.ne.s32.totalorder %s49_s3, %s944_s20  ;;  %p950_p8 = scmp.lt.s32.totalorder %s944_s20, %s944_s20 }
  0x33   :  { %p951_p9 = por %p950_p8, %p949_p7 }
  0x35   :  { %p952_p10 = pnand %p951_p9, %p945_p6 }
  0x37   :  { %955 = shalt.err (!%p952_p10)
}
  0x38   :  { %54 = dma.hbm_to_vmem [thread:$0]  %s1234_s2, 128, %s49_s3, [#allocation6], %s1051_s27, %s1051_s27, %s1052_s28  }
  0x39   :  { %s1055_s22 = smov [#allocation10]   ;;  %s1056_s24 = smov [#allocation13]  }
  0x3a   :  { %s72_s23 = sshll.u32 %s1055_s22, 4  ;;  %s100_s0 = sshll.u32 %s1056_s24, 4  ;;  %s73_s23 = int_to_ptr.vmem [resolvable:$true] %s72_s23  ;;  %s101_s0 = int_to_ptr.vmem [resolvable:$true] %s100_s0 }
  0x3b   :  { %s964_s25 = scalar_lea.vmem %s73_s23, 256  ;;  %p969_p12 = scmp.lt.s32.totalorder %s73_s23, %s73_s23 }
  0x3c   :  { %p965_p11 = scmp.ne.s32.totalorder %s73_s23, %s964_s25  ;;  %p970_p13 = scmp.lt.s32.totalorder %s964_s25, %s964_s25 }
  0x3e   :  { %p971_p0 = por %p970_p13, %p969_p12 }
  0x40   :  { %p972_p1 = pnand %p971_p0, %p965_p11 }
  0x42   :  { %975 = shalt.err (!%p972_p1)
}
  0x43   :  { %78 = dma.hbm_to_vmem [thread:$0]  %s1236_s4, 256, %s73_s23, [#allocation9], %s1051_s27, %s1051_s27, %s1052_s28  }
  0x44   :  { %s984_s2 = scalar_lea.vmem %s101_s0, 256  ;;  %p989_p3 = scmp.lt.s32.totalorder %s101_s0, %s101_s0 }
  0x45   :  { %p985_p2 = scmp.ne.s32.totalorder %s101_s0, %s984_s2  ;;  %p990_p4 = scmp.lt.s32.totalorder %s984_s2, %s984_s2 }
  0x47   :  { %p991_p5 = por %p990_p4, %p989_p3 }
  0x49   :  { %p992_p6 = pnand %p991_p5, %p985_p2 }
  0x4b   :  { %995 = shalt.err (!%p992_p6)
}
  0x4c   :  { %106 = dma.hbm_to_vmem [thread:$0]  %s1240_s8, 256, %s101_s0, [#allocation12], %s1051_s27, %s1051_s27, %s1052_s28  }
  0x4d   :  { %1036 = dma.done.wait [#allocation3], 32  }
  0x4e   :  { %1037 = vsyncadd [#allocation3], 4294967264 }
  0x4f   :  { %1038 = dma.done.wait [#allocation6], 160  }
  0x50   :  { %1039 = vsyncadd [#allocation6], 4294967136 }
  0x51   :  { %1040 = dma.done.wait [#allocation9], 512  }
  0x52   :  { %1041 = vsyncadd [#allocation9], 4294966784 }
  0x53   :  { %1042 = dma.done.wait [#allocation12], 512  }
  0x54   :  { %1043 = vsyncadd [#allocation12], 4294966784  ;;  %v1057_v0 = vmov 0.0   ;;  %vm1058_vm0 = vmmov 0   ;;  %v832_v1 = vld [vmem:[#allocation8 + $0x8] sm:$0xff]   ;;  %v833_v2 = vld [vmem:[#allocation10 + $0x8] sm:$0xff]   ;;  %v311_v37 = vlaneseq }
  0x55   :  { %760 = vmatprep.subr.bf16.mxu0 %v1057_v0  ;;  %768 = vmatprep.subr.bf16.mxu1 %v1057_v0  ;;  %v834_v3 = vld [vmem:[#allocation8] sm:$0xff]   ;;  %v835_v4 = vld [vmem:[#allocation10] sm:$0xff]   ;;  %vm157_vm1 = vcmask 261120   ;;  %v1185_v31 = vld [vmem:[#allocation7] sm:$0xf]  ;;  %vm430_vm2 = vcmask 57344  }
  0x56   :  { %764 = vmatprep.mubr.msk.bf16.mxu0 %vm1058_vm0, %v1057_v0  ;;  %772 = vmatprep.mubr.msk.bf16.mxu1 %vm1058_vm0, %v1057_v0  ;;  %v131_v5 = vld [vmem:[#allocation2] sm:$0x3]  ;;  %v132_v6 = vld [vmem:[#allocation5] sm:$0x3]  ;;  %v1187_v32 = vld [vmem:[#allocation7 + $0x4] sm:$0xf] }
  0x57   :  { %761 = vmatpush3.bf16.msra.mxu0 %v832_v1  ;;  %769 = vmatpush3.bf16.msra.mxu1 %v833_v2  ;;  %v133_v7 = vpack.c.bf16 %v131_v5, %v131_v5  ;;  %v201_v8 = vpack.c.bf16 %v132_v6, %v132_v6  ;;  %v723_v9 = vld [vmem:[%s1238_s6] ss:$0 sm:$0xff]  ;;  %s1059_s6 = smov 96   ;;  %v335_v33 = vsel %vm157_vm1, %v1185_v31, 0  ;;  %v388_v34 = vsel %vm157_vm1, %v1187_v32, 0 }
  0x58   :  { %762 = vmatprep.subr.bf16.mxu0 %v1057_v0  ;;  %770 = vmatprep.subr.bf16.mxu1 %v1057_v0  ;;  %v719_v19 = vld [vmem:[%s1237_s5] ss:$0 sm:$0xff]  ;;  %s1060_s5 = smov 32   ;;  %v1061_v35 = vmov 1966171168   ;;  %v312_v41 = vshrl.u32 %v311_v37, 7 }
  0x59   :  { %v309_v36 = vunpack.c.l.s4 %v1061_v35  ;;  %vm459_vm3 = vcmask 1043456   ;;  %vm302_vm4 = vcmask 254976   ;;  %vm455_vm5 = vcmask 64512  }
  0x5a   :  { %v327_v50 = vsub.s32 0, %v312_v41  ;;  %vm562_vm6 = vcmask 1041409  }
  0x5b   :  { %763 = vmatpush3.bf16.msra.mxu0 %v834_v3  ;;  %771 = vmatpush3.bf16.msra.mxu1 %v835_v4  ;;  %v310_v40 = vunpack.c.0.s8 %v309_v36 }
  0x5c   :  { %776 = vmatprep.subr.bf16.mxu0 %v1057_v0  ;;  %782 = vmatprep.subr.bf16.mxu1 %v1057_v0 }
  0x5d   :  { %v313_v45 = vsub.s32 %v310_v40, %v312_v41 }
  0x5e   :  { %765 = vmatmul.mubr.msk.bf16.vlgmr.msra.gmra.mxu0 %vm157_vm1, %v133_v7  ;;  %773 = vmatmul.mubr.msk.bf16.vlgmr.msra.gmra.mxu1 %vm157_vm1, %v201_v8 }
  0x5f   :  { %778 = vmatprep.mubr.msk.bf16.mxu0 %vm1058_vm0, %v1057_v0  ;;  %784 = vmatprep.mubr.msk.bf16.mxu1 %vm1058_vm0, %v1057_v0 }
  0x60   :  { %777 = vmatpush3.bf16.xpose.msra.mxu0 %v335_v33  ;;  %783 = vmatpush3.bf16.xpose.msra.mxu1 %v388_v34 }
  0x61   :  { %794 = vmatprep.subr.bf16.mxu1 %v1057_v0  ;;  %788 = vmatprep.subr.bf16.mxu0 %v1057_v0 }
 0x11e   :  { %v195_v10 = vpop.f32.mrf.mxu0  ;;  %v262_v11 = vpop.f32.mrf.mxu1 }
 0x11f   :  { %v263_v12 = vadd.f32 %v723_v9, %v262_v11  ;;  %v196_v20 = vadd.f32 %v719_v19, %v195_v10 }
 0x120   :  { %v766_v13 = vpop.f32.mrf.mxu0  ;;  %v774_v14 = vpop.f32.mrf.mxu1 }
 0x121   :  { %276 = vrot.lane.b32.xlu0 %v263_v12, %s1051_s27  ;;  %v268_v21 = vadd.f32 %v263_v12, %v196_v20 }
 0x122   :  { %v198_v15 = vpop.f32.mrf.mxu0  ;;  %v265_v16 = vpop.f32.mrf.mxu1 }
 0x123   :  { %v727_v22 = vmul.f32 -1.442695, %v268_v21  ;;  %v505_v15 = vsel %vm459_vm3, %v1187_v32, 0  ;;  %v460_v16 = vsel %vm459_vm3, %v1185_v31, 0 }
 0x124   :  { %v767_v17 = vpop.f32.mrf.mxu0  ;;  %v775_v18 = vpop.f32.mrf.mxu1 }
 0x125   :  { %840 = vpow2.f32 %v727_v22  ;;  %v836_v22 = vld [vmem:[#allocation11 + $0x8] sm:$0xff]  }
 0x132   :  { %v841_v23 = vpop.eup %840 }
 0x133   :  { %v272_v24 = vadd.f32 1.0, %v841_v23 }
 0x135   :  { %842 = vrcp.f32 %v272_v24 }
 0x142   :  { %v843_v25 = vpop.eup %842 }
 0x143   :  { %v286_v39 = vsub.f32 1.0, %v843_v25 }
 0x193   :  { %v277_v26 = vpop.permute.xlu0 %276 }
 0x194   :  { %v279_v27 = vmul.f32 %v843_v25, %v277_v26  ;;  %v837_v26 = vld [vmem:[#allocation11] sm:$0xff]  }
 0x196   :  { %281 = vrot.lane.b32.xlu0 %v279_v27, %s1051_s27  ;;  %s1062_s27 = smov [#allocation14]  }
 0x197   :  { %s693_s13 = sshll.u32 %s1062_s27, 4  ;;  %s694_s13 = int_to_ptr.vmem [resolvable:$true] %s693_s13 }
 0x198   :  { %s996_s14 = scalar_lea.vmem %s694_s13, 32  ;;  %p1001_p8 = scmp.lt.s32.totalorder %s694_s13, %s694_s13 }
 0x199   :  { %p997_p7 = scmp.ne.s32.totalorder %s694_s13, %s996_s14  ;;  %p1002_p9 = scmp.lt.s32.totalorder %s996_s14, %s996_s14 }
 0x19b   :  { %p1003_p10 = por %p1002_p9, %p1001_p8 }
 0x19d   :  { %p1004_p11 = pnand %p1003_p10, %p997_p7 }
 0x208   :  { %v282_v28 = vpop.permute.xlu0 %281 }
 0x209   :  { %v284_v29 = vadd.f32 %v282_v28, %v196_v20 }
 0x20b   :  { %844 = vtanh.f32 %v284_v29  ;;  %v838_v29 = vld [vmem:[#allocation13 + $0x8] sm:$0xff]  }
 0x218   :  { %v845_v30 = vpop.eup %844 }
 0x219   :  { %288 = vrot.lane.b32.xlu1 %v845_v30, %s1059_s6  ;;  %v839_v30 = vld [vmem:[#allocation13] sm:$0xff]  }
 0x21d   :  { %293 = vrot.lane.b32.xlu1 %v132_v6, %s1060_s5 }
 0x28b   :  { %v289_v38 = vpop.permute.xlu1 %288 }
 0x28c   :  { %v291_v43 = vmul.f32 %v289_v38, %v286_v39 }
 0x28f   :  { %v294_v42 = vpop.permute.xlu1 %293 }
 0x290   :  { %v296_v44 = vmul.f32 %v843_v25, %v294_v42 }
 0x292   :  { %v297_v46 = vadd.f32 %v296_v44, %v291_v43 }
 0x294   :  { %v306_v47 = vpack.c.bf16 %v297_v46, %v297_v46 }
 0x296   :  { %v314_v48 = vrot.slane %v306_v47, %v313_v45 }
 0x298   :  { %v321_v49 = vrot.slane %v314_v48, %v313_v45 }
 0x29a   :  { %v728_v51 = vpack.i.b16 %v321_v49, %v321_v49  ;;  %v323_v52 = vunpack.i.h.s16 %v321_v49 }
 0x29c   :  { %v328_v53 = vrot.slane %v728_v51, %v327_v50  ;;  %v377_v54 = vpack.i.b16 %v323_v52, %v323_v52 }
 0x29e   :  { %329 = vrot.lane.b32.xlu1 %v328_v53, %s1059_s6  ;;  %v381_v55 = vrot.slane %v377_v54, %v327_v50 }
 0x2a0   :  { %382 = vrot.lane.b32.xlu0 %v381_v55, %s1059_s6 }
 0x310   :  { %v330_v56 = vpop.permute.xlu1 %329 }
 0x311   :  { %779 = vmatmul.mubr.msk.bf16.vlgmr.msra.gmra.mxu0 %vm157_vm1, %v330_v56 }
 0x312   :  { %v383_v57 = vpop.permute.xlu0 %382  ;;  %790 = vmatprep.mubr.msk.bf16.mxu0 %vm1058_vm0, %v1057_v0  ;;  %789 = vmatpush3.bf16.msra.mxu0 %v460_v16 }
 0x313   :  { %785 = vmatmul.mubr.msk.bf16.vlgmr.msra.gmra.mxu1 %vm157_vm1, %v383_v57  ;;  %800 = vmatprep.subr.bf16.mxu0 %v1057_v0 }
 0x314   :  { %796 = vmatprep.mubr.msk.bf16.mxu1 %vm1058_vm0, %v1057_v0  ;;  %795 = vmatpush3.bf16.msra.mxu1 %v505_v15 }
 0x315   :  { %808 = vmatprep.subr.bf16.mxu1 %v1057_v0 }
 0x3d1   :  { %v371_v58 = vpop.f32.mrf.mxu0 }
 0x3d2   :  { %v431_v59 = vsel %vm430_vm2, %v371_v58, -inf }
 0x3d3   :  { %v424_v60 = vpop.f32.mrf.mxu1  ;;  %432 = vmax.xlane.f32.xlu1 %v431_v59  ;;  %v780_v61 = vpop.f32.mrf.mxu0 }
 0x3d4   :  { %v434_v62 = vsel %vm430_vm2, %v424_v60, -inf }
 0x3d5   :  { %435 = vmax.xlane.f32.xlu0 %v434_v62  ;;  %v374_v63 = vpop.f32.mrf.mxu0  ;;  %v786_v1 = vpop.f32.mrf.mxu1 }
 0x3d7   :  { %v781_v2 = vpop.f32.mrf.mxu0  ;;  %v427_v3 = vpop.f32.mrf.mxu1 }
 0x3d9   :  { %v787_v4 = vpop.f32.mrf.mxu1 }
 0x3e4   :  { %620 = vrot.lane.b32.xlu1 %v306_v47, %s1059_s6 }
 0x45c   :  { %v433_v5 = vpop.xlane.xlu1 %432 }
 0x45d   :  { %v437_v6 = vsub.f32 %v371_v58, %v433_v5 }
 0x45e   :  { %v436_v7 = vpop.xlane.xlu0 %435 }
 0x45f   :  { %v438_v8 = vsub.f32 %v424_v60, %v436_v7  ;;  %v439_v9 = vmul.f32 1.442695, %v437_v6 }
 0x460   :  { %v621_v28 = vpop.permute.xlu1 %620 }
 0x461   :  { %v441_v10 = vmul.f32 1.442695, %v438_v8 }
 0x463   :  { %846 = vpow2.f32 %v441_v10 }
 0x464   :  { %848 = vpow2.f32 %v439_v9 }
 0x470   :  { %v847_v11 = vpop.eup %846 }
 0x471   :  { %v446_v12 = vsel %vm430_vm2, %v847_v11, 0.0  ;;  %v849_v13 = vpop.eup %848 }
 0x472   :  { %447 = vadd.xlane.f32.xlu0 %v446_v12  ;;  %v443_v14 = vsel %vm430_vm2, %v849_v13, 0.0 }
 0x476   :  { %444 = vadd.xlane.f32.xlu0 %v443_v14 }
 0x48c   :  { %299 = vrot.lane.b32.xlu0 %v297_v46, %s1059_s6 }
 0x4fb   :  { %v448_v17 = vpop.xlane.xlu0 %447 }
 0x4fc   :  { %850 = vrcp.f32 %v448_v17 }
 0x4ff   :  { %v445_v18 = vpop.xlane.xlu0 %444 }
 0x500   :  { %852 = vrcp.f32 %v445_v18 }
 0x503   :  { %v300_v19 = vpop.permute.xlu0 %299 }
 0x504   :  { %303 = vst.msk [vmem:[#allocation14] sm:$0x3] %vm302_vm4, %v300_v19 }
 0x509   :  { %v851_v20 = vpop.eup %850 }
 0x50a   :  { %v452_v21 = vmul.f32 %v851_v20, %v847_v11 }
 0x50c   :  { %v454_v23 = vpack.c.bf16 %v452_v21, %v452_v21 }
 0x50d   :  { %v853_v24 = vpop.eup %852 }
 0x50e   :  { %797 = vmatmul.mubr.msk.bf16.vlgmr.msra.gmra.mxu1 %vm455_vm5, %v454_v23  ;;  %v451_v25 = vmul.f32 %v853_v24, %v849_v13 }
 0x50f   :  { %809 = vmatpush3.bf16.msra.mxu1 %v836_v22  ;;  %812 = vmatprep.mubr.msk.bf16.mxu1 %vm1058_vm0, %v1057_v0 }
 0x510   :  { %v453_v27 = vpack.c.bf16 %v451_v25, %v451_v25  ;;  %810 = vmatprep.subr.bf16.mxu1 %v1057_v0 }
 0x512   :  { %791 = vmatmul.mubr.msk.bf16.vlgmr.msra.gmra.mxu0 %vm455_vm5, %v453_v27 }
 0x513   :  { %811 = vmatpush3.bf16.msra.mxu1 %v837_v26  ;;  %804 = vmatprep.mubr.msk.bf16.mxu0 %vm1058_vm0, %v1057_v0 }
 0x514   :  { %801 = vmatpush3.bf16.msra.mxu0 %v838_v29 }
 0x515   :  { %802 = vmatprep.subr.bf16.mxu0 %v1057_v0 }
 0x516   :  { %813 = vmatmul.mubr.msk.bf16.vlgmr.msra.gmra.mxu1 %vm157_vm1, %v621_v28 }
 0x518   :  { %803 = vmatpush3.bf16.msra.mxu0 %v839_v30 }
 0x5ce   :  { %v541_v31 = vpop.f32.mrf.mxu1 }
 0x5cf   :  { %v552_v32 = vpack.c.bf16 %v541_v31, %v541_v31 }
 0x5d0   :  { %v798_v33 = vpop.f32.mrf.mxu1 }
 0x5d1   :  { %v560_v34 = vunpack.c.l.b16 %v552_v32 }
 0x5d2   :  { %v496_v35 = vpop.f32.mrf.mxu0  ;;  %v544_v36 = vpop.f32.mrf.mxu1 }
 0x5d3   :  { %v551_v37 = vpack.c.bf16 %v496_v35, %v496_v35  ;;  %v561_v40 = vrot.slane %v560_v34, 7 }
 0x5d4   :  { %v792_v38 = vpop.f32.mrf.mxu0  ;;  %v799_v39 = vpop.f32.mrf.mxu1 }
 0x5d5   :  { %v559_v41 = vunpack.c.l.b16 %v551_v37 }
 0x5d6   :  { %v499_v42 = vpop.f32.mrf.mxu0  ;;  %v671_v43 = vpop.f32.mrf.mxu1 }
 0x5d7   :  { %v563_v44 = vsel %vm562_vm6, %v561_v40, %v559_v41 }
 0x5d8   :  { %v564_v45 = vpack.c.b16 %v563_v44, %v563_v44  ;;  %v793_v46 = vpop.f32.mrf.mxu0  ;;  %v814_v0 = vpop.f32.mrf.mxu1 }
 0x5da   :  { %805 = vmatmul.mubr.msk.bf16.vlgmr.msra.gmra.mxu0 %vm157_vm1, %v564_v45  ;;  %v674_v47 = vpop.f32.mrf.mxu1 }
 0x5dc   :  { %v815_v48 = vpop.f32.mrf.mxu1 }
 0x5dd   :  { %1007 = shalt.err (!%p1004_p11)
}
 0x5de   :  { %696 = dma.vmem_to_hbm [thread:$0]  %s694_s13, 32, %s1242_s10, [#allocation4]   ;;  %v739_v50 = vld [vmem:[%s1241_s9] ss:$0 sm:$0xff] }
 0x5df   :  { %s1063_s18 = smov [#allocation15]  }
 0x5e0   :  { %s703_s19 = sshll.u32 %s1063_s18, 4  ;;  %s704_s19 = int_to_ptr.vmem [resolvable:$true] %s703_s19 }
 0x5e1   :  { %s1016_s20 = scalar_lea.vmem %s704_s19, 32  ;;  %p1021_p13 = scmp.lt.s32.totalorder %s704_s19, %s704_s19 }
 0x5e2   :  { %p1017_p12 = scmp.ne.s32.totalorder %s704_s19, %s1016_s20  ;;  %p1022_p0 = scmp.lt.s32.totalorder %s1016_s20, %s1016_s20 }
 0x5e4   :  { %p1023_p1 = por %p1022_p0, %p1021_p13 }
 0x5e6   :  { %p1024_p2 = pnand %p1023_p1, %p1017_p12 }
 0x69a   :  { %v614_v49 = vpop.f32.mrf.mxu0 }
 0x69b   :  { %v672_v51 = vadd.f32 %v671_v43, %v614_v49 }
 0x69c   :  { %v806_v52 = vpop.f32.mrf.mxu0 }
 0x69d   :  { %v684_v53 = vadd.f32 %v739_v50, %v672_v51 }
 0x69e   :  { %v617_v54 = vpop.f32.mrf.mxu0 }
 0x69f   :  { %854 = vtanh.f32 %v684_v53 }
 0x6a0   :  { %v807_v55 = vpop.f32.mrf.mxu0 }
 0x6ac   :  { %v855_v56 = vpop.eup %854 }
 0x6ad   :  { %686 = vst.msk [vmem:[#allocation15] sm:$0x3] %vm302_vm4, %v855_v56 }
 0x6ae   :  { %1027 = shalt.err (!%p1024_p2)
}
 0x6af   :  { %706 = dma.vmem_to_hbm [thread:$0]  %s704_s19, 32, %s1243_s11, [#allocation16]  }
 0x6b0   :  { %1044 = dma.done.wait [#allocation4], 32  }
 0x6b1   :  { %1045 = vsyncadd [#allocation4], 4294967264 }
 0x6b2   :  { %1046 = dma.done.wait [#allocation16], 32  }
 0x6b3   :  { %1047 = vsyncadd [#allocation16], 4294967264 }
 0x6b4   :  { %713 = vsyncpa [#allocation3], 1 }
 0x6b5   :  { %714 = vsyncpa [#allocation6], 1 }
 0x6b6   :  { %715 = vsyncpa [#allocation9], 1 }
 0x6b7   :  { %716 = vsyncpa [#allocation12], 1 }
 0x6b8   :  { %717 = vsyncpa [#allocation4], 1 }
 0x6b9   :  { %718 = vsyncpa [#allocation16], 1 }

</bundles_post_ra>
